<compile_context>
chip_gen: v7x
topology: tpu7x:2x2x1
jax: 0.10.0
libtpu: 0.0.40
codegen_flags: <defaults>
</compile_context>

<pallas_src>
import jax
import jax.numpy as jnp
from jax.experimental import pallas as pl
from jax.experimental.pallas import tpu as pltpu


def _round_up(x, m):
    return ((x + m - 1) // m) * m


def _separate_concat_kernel(x1_ref, x2_ref,
                            w1_ref, w2_ref, w3a_ref, w3b_ref,
                            b1_ref, b2_ref, b3_ref,
                            o_ref):
    cdt = w1_ref.dtype
    # Cast activations to the MXU compute dtype inside the kernel; bias add
    # and ReLU stay in f32 on the f32 accumulator.
    x1 = x1_ref[...].astype(cdt)
    x2 = x2_ref[...].astype(cdt)
    h1 = jnp.dot(x1, w1_ref[...], preferred_element_type=jnp.float32) + b1_ref[...]
    h1 = jnp.maximum(h1, 0.0)
    h2 = jnp.dot(x2, w2_ref[...], preferred_element_type=jnp.float32) + b2_ref[...]
    h2 = jnp.maximum(h2, 0.0)
    # Post-concat ReLU of the PyTorch module is a no-op (h1, h2 >= 0).
    # fc3 as two accumulating K=E matmuls == concat + K=2E matmul, minus the
    # (tm, 2E) temporaries and the XLU concat.
    out = (jnp.dot(h1.astype(cdt), w3a_ref[...], preferred_element_type=jnp.float32)
           + jnp.dot(h2.astype(cdt), w3b_ref[...], preferred_element_type=jnp.float32)
           + b3_ref[...])
    o_ref[...] = out.astype(o_ref.dtype)


def _tpu_vmem_and_megacore():
    """Returns (physical VMEM bytes per core, chip has >=2 TensorCores)."""
    kind = ""
    try:
        kind = jax.devices()[0].device_kind.lower()
    except Exception:
        pass
    vmem = None
    try:
        vmem = int(pltpu.get_tpu_info().vmem_capacity_bytes)
    except Exception:
        vmem = None
    if vmem is None or vmem <= 0:
        if "v7" in kind:
            vmem = 64 * 1024 * 1024
        elif "tpu" in kind:
            vmem = 128 * 1024 * 1024
        else:
            vmem = 32 * 1024 * 1024          # conservative fallback
    megacore = any(t in kind for t in ("v4", "v5p", "v7"))
    return vmem, megacore


def _choose_row_tile(M8, E, x_bytes, out_bytes, compute_bytes, budget,
                     megacore, requested=None):
    """Largest row tile (multiple of 8, <=1024) fitting the VMEM budget."""
    El = _round_up(E, 128)     # lanes a VMEM block actually occupies
    Es = _round_up(E, 8)       # sublanes of the weight blocks
    # Grid-constant blocks (DMA'd once; allocation is double-buffered):
    #   4 weights (E,E) in compute dtype + 3 f32 (1,E) biases.
    fixed = 2 * (4 * Es * El * compute_bytes + 3 * 8 * El * 4)
    # Per-row VMEM: double-buffered x1/x2 input blocks, double-buffered output
    # block, f32 h1/h2, compute-dtype casts of x1/x2/h1/h2, f32 out temp.
    per_row = El * (2 * 2 * x_bytes + 2 * out_bytes + 2 * 4
                    + 4 * compute_bytes + 4)
    tm = (budget - fixed) // per_row
    tm = int(max(8, min(tm, 1024)))
    tm = (tm // 8) * 8
    if requested is not None:
        tm = min(tm, max(8, _round_up(int(requested), 8)))
    tm = min(tm, M8)
    if megacore and M8 > 8:
        # Keep >= 2 grid steps only on 2-TensorCore chips so the "parallel"
        # axis can shard across cores; never split on single-TC v5e/v6e.
        tm = min(tm, _round_up((M8 + 1) // 2, 8))
    tm = max(tm, 8)
    return tm, fixed, per_row


def prepare_params(params, compute_dtype=jnp.bfloat16):
    """One-time weight prep, hoisted out of the per-call forward:
    transpose to x @ W layout, split W3 into its h1/h2 halves, cast to the
    MXU compute dtype; biases become (1, E) f32 rows."""
    cdt = jnp.dtype(compute_dtype)
    E = params["w1"].shape[0]
    w3_t = params["w3"].T                        # (2E, E)
    return {
        "w1": params["w1"].T.astype(cdt),        # (E, E)
        "w2": params["w2"].T.astype(cdt),        # (E, E)
        "w3a": w3_t[:E, :].astype(cdt),          # (E, E) — multiplies h1
        "w3b": w3_t[E:, :].astype(cdt),          # (E, E) — multiplies h2
        "b1": params["b1"].reshape(1, E).astype(jnp.float32),
        "b2": params["b2"].reshape(1, E).astype(jnp.float32),
        "b3": params["b3"].reshape(1, E).astype(jnp.float32),
    }


def separate_concat(mixtures, itf_speaker, prepared, *, tm=None):
    """mixtures, itf_speaker: [B, L, E] -> output [B, L, E]."""
    B, L, E = mixtures.shape
    M = B * L
    out_dtype = mixtures.dtype
    cdt = prepared["w1"].dtype
    cb = jnp.dtype(cdt).itemsize
    xb = jnp.dtype(mixtures.dtype).itemsize
    ob = jnp.dtype(out_dtype).itemsize

    vmem_cap, megacore = _tpu_vmem_and_megacore()
    budget = max(vmem_cap // 2, 16 * 1024 * 1024)

    M8 = _round_up(M, 8)
    tm_sel, fixed_bytes, per_row = _choose_row_tile(
        M8, E, xb, ob, cb, budget, megacore, requested=tm)

    # Only pad rows (never lanes) in HBM, and only when batch*length is ragged.
    def rows(x):
        x = x.reshape(M, E)
        if M8 != M:
            x = jnp.pad(x, ((0, M8 - M), (0, 0)))
        return x

    x1 = rows(mixtures)
    x2 = rows(itf_speaker)

    grid = (pl.cdiv(M8, tm_sel),)
    row_spec = pl.BlockSpec((tm_sel, E), lambda i: (i, 0))
    w_spec = pl.BlockSpec((E, E), lambda i: (0, 0))
    b_spec = pl.BlockSpec((1, E), lambda i: (0, 0))

    flops = 8 * M8 * E * E                         # fc1 + fc2 + fc3 (K=2E)
    bytes_accessed = (2 * M8 * E * xb              # x1, x2 (native dtype)
                      + M8 * E * ob                # out
                      + 4 * E * E * cb             # weights
                      + 3 * E * 4)                 # biases

    vmem_needed = fixed_bytes + tm_sel * per_row
    # TODO(synk): add a feature-dim (N/K) tiling fallback for embed dims large
    # enough that the resident weights alone overflow VMEM (esp. v7x 64 MiB).
    vmem_limit = int(min(max(2 * vmem_needed, 32 * 1024 * 1024),
                         (vmem_cap * 9) // 10))

    out = pl.pallas_call(
        _separate_concat_kernel,
        out_shape=jax.ShapeDtypeStruct((M8, E), out_dtype),
        grid_spec=pltpu.PrefetchScalarGridSpec(
            num_scalar_prefetch=0,
            grid=grid,
            in_specs=[row_spec, row_spec,
                      w_spec, w_spec, w_spec, w_spec,
                      b_spec, b_spec, b_spec],
            out_specs=row_spec,
        ),
        compiler_params=pltpu.CompilerParams(
            dimension_semantics=("parallel",),
            vmem_limit_bytes=vmem_limit),
        cost_estimate=pl.CostEstimate(flops=flops, transcendentals=0,
                                      bytes_accessed=bytes_accessed),
    )(x1, x2,
      prepared["w1"], prepared["w2"], prepared["w3a"], prepared["w3b"],
      prepared["b1"], prepared["b2"], prepared["b3"])

    if M8 != M:
        out = out[:M]
    return out.reshape(B, L, E)


def init_params(key, embed_dim):
    """Deterministic synthetic init matching nn.Linear parameter shapes."""
    ks = jax.random.split(key, 6)

    def u(k, shape, fan_in):
        bound = 1.0 / jnp.sqrt(fan_in)
        return jax.random.uniform(k, shape, jnp.float32, -bound, bound)

    E = embed_dim
    return {
        "w1": u(ks[0], (E, E), E), "b1": u(ks[1], (E,), E),
        "w2": u(ks[2], (E, E), E), "b2": u(ks[3], (E,), E),
        "w3": u(ks[4], (E, 2 * E), 2 * E), "b3": u(ks[5], (E,), 2 * E),
    }


def _reference(mixtures, itf_speaker, p):
    h1 = jax.nn.relu(mixtures @ p["w1"].T + p["b1"])
    h2 = jax.nn.relu(itf_speaker @ p["w2"].T + p["b2"])
    x = jnp.concatenate([h1, h2], axis=-1)
    x = jax.nn.relu(x)
    return x @ p["w3"].T + p["b3"]


if __name__ == "__main__":
    B, L, E = 2, 8, 32
    key = jax.random.PRNGKey(0)
    k_mix, k_itf, k_par = jax.random.split(key, 3)

    mixtures = jax.random.normal(k_mix, (B, L, E), jnp.float32)
    itf_speaker = jax.random.normal(k_itf, (B, L, E), jnp.float32)
    params = init_params(k_par, E)

    ref = _reference(mixtures, itf_speaker, params)

    fwd = jax.jit(separate_concat)

    # Exactness check: f32 compute path must match the reference tightly.
    prep_f32 = prepare_params(params, compute_dtype=jnp.float32)
    out_f32 = jax.block_until_ready(fwd(mixtures, itf_speaker, prep_f32))
    assert out_f32.shape == (B, L, E)
    assert jnp.allclose(out_f32, ref, atol=1e-5, rtol=1e-5)

    # Default fast path: bf16 MXU operands with f32 accumulation.
    prep_bf16 = prepare_params(params)
    out = jax.block_until_ready(fwd(mixtures, itf_speaker, prep_bf16))
    assert out.shape == (B, L, E)
    assert float(jnp.max(jnp.abs(out - ref))) < 7.5e-2

    print("KERNEL_OK")
</pallas_src>

<mosaic_0001>
module attributes {stable_mosaic.version = 11 : i64} {
  func.func @_separate_concat_kernel(%arg0: i32, %arg1: memref<16x32xf32, #tpu.memory_space<vmem>>, %arg2: memref<16x32xf32, #tpu.memory_space<vmem>>, %arg3: memref<32x32xf32, #tpu.memory_space<vmem>>, %arg4: memref<32x32xf32, #tpu.memory_space<vmem>>, %arg5: memref<32x32xf32, #tpu.memory_space<vmem>>, %arg6: memref<32x32xf32, #tpu.memory_space<vmem>>, %arg7: memref<1x32xf32, #tpu.memory_space<vmem>>, %arg8: memref<1x32xf32, #tpu.memory_space<vmem>>, %arg9: memref<1x32xf32, #tpu.memory_space<vmem>>, %arg10: memref<16x32xf32, #tpu.memory_space<vmem>>) attributes {dimension_semantics = [#tpu.dimension_semantics<parallel>], iteration_bounds = array<i64: 1>, scalar_prefetch = 0 : i64, scratch_operands = 0 : i64, tpu.core_type = #tpu.core_type<tc>, window_params = [{transform_indices = @transform_0, window_bounds = array<i64: 16, 32>}, {transform_indices = @transform_1, window_bounds = array<i64: 16, 32>}, {pipeline_mode = #tpu.pipeline_mode<synchronous>, transform_indices = @transform_2, window_bounds = array<i64: 32, 32>}, {pipeline_mode = #tpu.pipeline_mode<synchronous>, transform_indices = @transform_3, window_bounds = array<i64: 32, 32>}, {pipeline_mode = #tpu.pipeline_mode<synchronous>, transform_indices = @transform_4, window_bounds = array<i64: 32, 32>}, {pipeline_mode = #tpu.pipeline_mode<synchronous>, transform_indices = @transform_5, window_bounds = array<i64: 32, 32>}, {pipeline_mode = #tpu.pipeline_mode<synchronous>, transform_indices = @transform_6, window_bounds = array<i64: 1, 32>}, {pipeline_mode = #tpu.pipeline_mode<synchronous>, transform_indices = @transform_7, window_bounds = array<i64: 1, 32>}, {pipeline_mode = #tpu.pipeline_mode<synchronous>, transform_indices = @transform_8, window_bounds = array<i64: 1, 32>}, {transform_indices = @transform_9, window_bounds = array<i64: 16, 32>}]} {
    %c0 = arith.constant 0 : index
    %c0_0 = arith.constant 0 : index
    %0 = vector.load %arg1[%c0, %c0_0] : memref<16x32xf32, #tpu.memory_space<vmem>>, vector<16x32xf32>
    %c0_1 = arith.constant 0 : index
    %c0_2 = arith.constant 0 : index
    %1 = vector.load %arg2[%c0_1, %c0_2] : memref<16x32xf32, #tpu.memory_space<vmem>>, vector<16x32xf32>
    %c0_3 = arith.constant 0 : index
    %c0_4 = arith.constant 0 : index
    %2 = vector.load %arg3[%c0_3, %c0_4] : memref<32x32xf32, #tpu.memory_space<vmem>>, vector<32x32xf32>
    %cst = arith.constant dense<0.000000e+00> : vector<16x32xf32>
    %3 = tpu.matmul %0, %2, %cst {dimension_numbers = #tpu.dot_dimension_numbers<[1], [0], [0], [1], [0, 0, 1, 1], [], []>} : vector<16x32xf32>, vector<32x32xf32>, vector<16x32xf32> -> vector<16x32xf32>
    %c0_5 = arith.constant 0 : index
    %c0_6 = arith.constant 0 : index
    %4 = vector.load %arg7[%c0_5, %c0_6] : memref<1x32xf32, #tpu.memory_space<vmem>>, vector<1x32xf32>
    %5 = vector.broadcast %4 : vector<1x32xf32> to vector<16x32xf32>
    %6 = arith.addf %3, %5 : vector<16x32xf32>
    %cst_7 = arith.constant 0.000000e+00 : f32
    %7 = vector.broadcast %cst_7 : f32 to vector<16x32xf32>
    %8 = arith.maximumf %6, %7 : vector<16x32xf32>
    %c0_8 = arith.constant 0 : index
    %c0_9 = arith.constant 0 : index
    %9 = vector.load %arg4[%c0_8, %c0_9] : memref<32x32xf32, #tpu.memory_space<vmem>>, vector<32x32xf32>
    %cst_10 = arith.constant dense<0.000000e+00> : vector<16x32xf32>
    %10 = tpu.matmul %1, %9, %cst_10 {dimension_numbers = #tpu.dot_dimension_numbers<[1], [0], [0], [1], [0, 0, 1, 1], [], []>} : vector<16x32xf32>, vector<32x32xf32>, vector<16x32xf32> -> vector<16x32xf32>
    %c0_11 = arith.constant 0 : index
    %c0_12 = arith.constant 0 : index
    %11 = vector.load %arg8[%c0_11, %c0_12] : memref<1x32xf32, #tpu.memory_space<vmem>>, vector<1x32xf32>
    %12 = vector.broadcast %11 : vector<1x32xf32> to vector<16x32xf32>
    %13 = arith.addf %10, %12 : vector<16x32xf32>
    %cst_13 = arith.constant 0.000000e+00 : f32
    %14 = vector.broadcast %cst_13 : f32 to vector<16x32xf32>
    %15 = arith.maximumf %13, %14 : vector<16x32xf32>
    %c0_14 = arith.constant 0 : index
    %c0_15 = arith.constant 0 : index
    %16 = vector.load %arg5[%c0_14, %c0_15] : memref<32x32xf32, #tpu.memory_space<vmem>>, vector<32x32xf32>
    %cst_16 = arith.constant dense<0.000000e+00> : vector<16x32xf32>
    %17 = tpu.matmul %8, %16, %cst_16 {dimension_numbers = #tpu.dot_dimension_numbers<[1], [0], [0], [1], [0, 0, 1, 1], [], []>} : vector<16x32xf32>, vector<32x32xf32>, vector<16x32xf32> -> vector<16x32xf32>
    %c0_17 = arith.constant 0 : index
    %c0_18 = arith.constant 0 : index
    %18 = vector.load %arg6[%c0_17, %c0_18] : memref<32x32xf32, #tpu.memory_space<vmem>>, vector<32x32xf32>
    %cst_19 = arith.constant dense<0.000000e+00> : vector<16x32xf32>
    %19 = tpu.matmul %15, %18, %cst_19 {dimension_numbers = #tpu.dot_dimension_numbers<[1], [0], [0], [1], [0, 0, 1, 1], [], []>} : vector<16x32xf32>, vector<32x32xf32>, vector<16x32xf32> -> vector<16x32xf32>
    %20 = arith.addf %17, %19 : vector<16x32xf32>
    %c0_20 = arith.constant 0 : index
    %c0_21 = arith.constant 0 : index
    %21 = vector.load %arg9[%c0_20, %c0_21] : memref<1x32xf32, #tpu.memory_space<vmem>>, vector<1x32xf32>
    %22 = vector.broadcast %21 : vector<1x32xf32> to vector<16x32xf32>
    %23 = arith.addf %20, %22 : vector<16x32xf32>
    %c0_22 = arith.constant 0 : index
    %c0_23 = arith.constant 0 : index
    %24 = vector.load %arg10[%c0_22, %c0_23] : memref<16x32xf32, #tpu.memory_space<vmem>>, vector<16x32xf32>
    tpu.vector_store %arg10[%c0_22, %c0_23], %23 {strides = array<i32>} : memref<16x32xf32, #tpu.memory_space<vmem>>, vector<16x32xf32>,
    return
  }
  func.func @transform_0(%arg0: i32) -> (i32, i32) {
    %c0_i32 = arith.constant 0 : i32
    %c0_i32_0 = arith.constant 0 : i32
    return %arg0, %c0_i32 : i32, i32
  }
  func.func @transform_1(%arg0: i32) -> (i32, i32) {
    %c0_i32 = arith.constant 0 : i32
    %c0_i32_0 = arith.constant 0 : i32
    return %arg0, %c0_i32 : i32, i32
  }
  func.func @transform_2(%arg0: i32) -> (i32, i32) {
    %c0_i32 = arith.constant 0 : i32
    %c0_i32_0 = arith.constant 0 : i32
    %c0_i32_1 = arith.constant 0 : i32
    return %c0_i32, %c0_i32_0 : i32, i32
  }
  func.func @transform_3(%arg0: i32) -> (i32, i32) {
    %c0_i32 = arith.constant 0 : i32
    %c0_i32_0 = arith.constant 0 : i32
    %c0_i32_1 = arith.constant 0 : i32
    return %c0_i32, %c0_i32_0 : i32, i32
  }
  func.func @transform_4(%arg0: i32) -> (i32, i32) {
    %c0_i32 = arith.constant 0 : i32
    %c0_i32_0 = arith.constant 0 : i32
    %c0_i32_1 = arith.constant 0 : i32
    return %c0_i32, %c0_i32_0 : i32, i32
  }
  func.func @transform_5(%arg0: i32) -> (i32, i32) {
    %c0_i32 = arith.constant 0 : i32
    %c0_i32_0 = arith.constant 0 : i32
    %c0_i32_1 = arith.constant 0 : i32
    return %c0_i32, %c0_i32_0 : i32, i32
  }
  func.func @transform_6(%arg0: i32) -> (i32, i32) {
    %c0_i32 = arith.constant 0 : i32
    %c0_i32_0 = arith.constant 0 : i32
    %c0_i32_1 = arith.constant 0 : i32
    return %c0_i32, %c0_i32_0 : i32, i32
  }
  func.func @transform_7(%arg0: i32) -> (i32, i32) {
    %c0_i32 = arith.constant 0 : i32
    %c0_i32_0 = arith.constant 0 : i32
    %c0_i32_1 = arith.constant 0 : i32
    return %c0_i32, %c0_i32_0 : i32, i32
  }
  func.func @transform_8(%arg0: i32) -> (i32, i32) {
    %c0_i32 = arith.constant 0 : i32
    %c0_i32_0 = arith.constant 0 : i32
    %c0_i32_1 = arith.constant 0 : i32
    return %c0_i32, %c0_i32_0 : i32, i32
  }
  func.func @transform_9(%arg0: i32) -> (i32, i32) {
    %c0_i32 = arith.constant 0 : i32
    %c0_i32_0 = arith.constant 0 : i32
    return %arg0, %c0_i32 : i32, i32
  }
}

</mosaic_0001>

<bundles_post_ra>
// kernel: separate_concat.1
= control target key start
LH: loop header
LB: loop body
LE: loop exit
PB: predicated region body
PF: predicated region fallthrough
CT: control target
= control target key end

     0   :  { %14 = vsyncpa [#allocation3], 0  ;;  %s996_s0 = inlined_call_operand.hbm [shape: f32[16,32], index: 0, kind: input, shape index: {}]   ;;  %s997_s1 = inlined_call_operand.hbm [shape: f32[16,32], index: 1, kind: input, shape index: {}]   ;;  %s998_s2 = inlined_call_operand.hbm [shape: f32[32,32], index: 2, kind: input, shape index: {}]   ;;  %s999_s3 = inlined_call_operand.hbm [shape: f32[32,32], index: 3, kind: input, shape index: {}]   ;;  %s1000_s4 = inlined_call_operand.vmem [shape: f32[32,32], index: 4, kind: input, shape index: {}]   ;;  %s1001_s5 = inlined_call_operand.hbm [shape: f32[32,32], index: 5, kind: input, shape index: {}]   ;;  %s1002_s6 = inlined_call_operand.vmem [shape: f32[1,32], index: 6, kind: input, shape index: {}]   ;;  %s1003_s7 = inlined_call_operand.vmem [shape: f32[1,32], index: 7, kind: input, shape index: {}]   ;;  %s1004_s8 = inlined_call_operand.hbm [shape: f32[1,32], index: 8, kind: input, shape index: {}]   ;;  %s1005_s9 = inlined_call_operand.hbm [shape: f32[16,32], index: 9, kind: output, shape index: {}]  }
   0x1   :  { %15 = vsyncpa [#allocation6], 0 }
   0x2   :  { %16 = vsyncpa [#allocation9], 0 }
   0x3   :  { %17 = vsyncpa [#allocation12], 0 }
   0x4   :  { %18 = vsyncpa [#allocation4], 0  ;;  %s793_s30 = smov [#allocation5]   ;;  %s794_s11 = smov [#allocation8]  }
   0x5   :  { %s36_s10 = sshll.u32 %s793_s30, 4  ;;  %s60_s12 = sshll.u32 %s794_s11, 4  ;;  %s37_s10 = int_to_ptr.vmem [resolvable:$true] %s36_s10  ;;  %s852_s12 = int_to_ptr.vmem [resolvable:$true] %s60_s12 }
   0x6   :  { %s629_s15 = scalar_lea.hbm %s997_s1, 256 }
   0x7   :  { %p630_p0 = scmp.ne.s32.totalorder %s997_s1, %s629_s15  ;;  %p633_p1 = scmp.lt.u32.totalorder %s629_s15, %s997_s1 }
   0x9   :  { %p635_p2 = pnand %p633_p1, %p630_p0 }
   0xb   :  { %638 = shalt.err (!%p635_p2)
}
   0xc   :  { %s639_s20 = scalar_lea.vmem %s37_s10, 256  ;;  %p644_p4 = scmp.lt.s32.totalorder %s37_s10, %s37_s10 }
   0xd   :  { %p640_p3 = scmp.ne.s32.totalorder %s37_s10, %s639_s20  ;;  %p645_p5 = scmp.lt.s32.totalorder %s639_s20, %s639_s20 }
   0xf   :  { %p646_p6 = por %p645_p5, %p644_p4 }
  0x11   :  { %p647_p7 = pnand %p646_p6, %p640_p3 }
  0x13   :  { %650 = shalt.err (!%p647_p7)
}
  0x14   :  { %s795_s21 = smov 128   ;;  %s796_s22 = smov 8  }
  0x15   :  { %42 = dma.hbm_to_vmem [thread:$0]  %s997_s1, 256, %s37_s10, [#allocation6], %s795_s21, %s795_s21, %s796_s22  }
  0x16   :  { %s651_s27 = scalar_lea.hbm %s999_s3, 512 }
  0x17   :  { %p652_p8 = scmp.ne.s32.totalorder %s999_s3, %s651_s27  ;;  %p655_p9 = scmp.lt.u32.totalorder %s651_s27, %s999_s3 }
  0x19   :  { %p657_p10 = pnand %p655_p9, %p652_p8 }
  0x1b   :  { %660 = shalt.err (!%p657_p10)
}
  0x1c   :  { %s661_s13 = scalar_lea.vmem %s852_s12, 512  ;;  %p666_p12 = scmp.lt.s32.totalorder %s852_s12, %s852_s12 }
  0x1d   :  { %p662_p11 = scmp.ne.s32.totalorder %s852_s12, %s661_s13  ;;  %p667_p13 = scmp.lt.s32.totalorder %s661_s13, %s661_s13 }
  0x1f   :  { %p668_p0 = por %p667_p13, %p666_p12 }
  0x21   :  { %p669_p1 = pnand %p668_p0, %p662_p11 }
  0x23   :  { %672 = shalt.err (!%p669_p1)
}
  0x24   :  { %66 = dma.hbm_to_vmem [thread:$0]  %s999_s3, 512, %s852_s12, [#allocation9], %s795_s21, %s795_s21, %s796_s22  }
  0x25   :  { %s797_s14 = smov [#allocation2]   ;;  %s798_s16 = smov [#allocation7]  }
  0x26   :  { %s24_s15 = sshll.u32 %s797_s14, 4  ;;  %s48_s17 = sshll.u32 %s798_s16, 4  ;;  %s25_s15 = int_to_ptr.vmem [resolvable:$true] %s24_s15  ;;  %s889_s17 = int_to_ptr.vmem [resolvable:$true] %s48_s17 }
  0x27   :  { %s673_s20 = scalar_lea.hbm %s996_s0, 256 }
  0x28   :  { %p674_p2 = scmp.ne.s32.totalorder %s996_s0, %s673_s20  ;;  %p677_p3 = scmp.lt.u32.totalorder %s673_s20, %s996_s0 }
  0x2a   :  { %p679_p4 = pnand %p677_p3, %p674_p2 }
  0x2c   :  { %682 = shalt.err (!%p679_p4)
}
  0x2d   :  { %s683_s3 = scalar_lea.vmem %s25_s15, 256  ;;  %p688_p6 = scmp.lt.s32.totalorder %s25_s15, %s25_s15 }
  0x2e   :  { %p684_p5 = scmp.ne.s32.totalorder %s25_s15, %s683_s3  ;;  %p689_p7 = scmp.lt.s32.totalorder %s683_s3, %s683_s3 }
  0x30   :  { %p690_p8 = por %p689_p7, %p688_p6 }
  0x32   :  { %p691_p9 = pnand %p690_p8, %p684_p5 }
  0x34   :  { %694 = shalt.err (!%p691_p9)
}
  0x35   :  { %30 = dma.hbm_to_vmem [thread:$0]  %s996_s0, 256, %s25_s15, [#allocation3], %s795_s21, %s795_s21, %s796_s22  }
  0x36   :  { %s695_s30 = scalar_lea.hbm %s998_s2, 512 }
  0x37   :  { %p696_p10 = scmp.ne.s32.totalorder %s998_s2, %s695_s30  ;;  %p699_p11 = scmp.lt.u32.totalorder %s695_s30, %s998_s2 }
  0x39   :  { %p701_p12 = pnand %p699_p11, %p696_p10 }
  0x3b   :  { %704 = shalt.err (!%p701_p12)
}
  0x3c   :  { %s705_s14 = scalar_lea.vmem %s889_s17, 512  ;;  %p710_p0 = scmp.lt.s32.totalorder %s889_s17, %s889_s17 }
  0x3d   :  { %p706_p13 = scmp.ne.s32.totalorder %s889_s17, %s705_s14  ;;  %p711_p1 = scmp.lt.s32.totalorder %s705_s14, %s705_s14 }
  0x3f   :  { %p712_p2 = por %p711_p1, %p710_p0 }
  0x41   :  { %p713_p3 = pnand %p712_p2, %p706_p13 }
  0x43   :  { %716 = shalt.err (!%p713_p3)
}
  0x44   :  { %54 = dma.hbm_to_vmem [thread:$0]  %s998_s2, 512, %s889_s17, [#allocation6], %s795_s21, %s795_s21, %s796_s22  }
  0x45   :  { %s799_s16 = smov [#allocation10]   ;;  %s800_s19 = smov [#allocation11]  }
  0x46   :  { %s74_s18 = sshll.u32 %s799_s16, 4  ;;  %s91_s20 = sshll.u32 %s800_s19, 4  ;;  %s75_s18 = int_to_ptr.vmem [resolvable:$true] %s74_s18  ;;  %s92_s20 = int_to_ptr.vmem [resolvable:$true] %s91_s20 }
  0x47   :  { %s717_s25 = scalar_lea.hbm %s1001_s5, 512 }
  0x48   :  { %p718_p4 = scmp.ne.s32.totalorder %s1001_s5, %s717_s25  ;;  %p721_p5 = scmp.lt.u32.totalorder %s717_s25, %s1001_s5 }
  0x4a   :  { %p723_p6 = pnand %p721_p5, %p718_p4 }
  0x4c   :  { %726 = shalt.err (!%p723_p6)
}
  0x4d   :  { %s727_s2 = scalar_lea.vmem %s75_s18, 512  ;;  %p732_p8 = scmp.lt.s32.totalorder %s75_s18, %s75_s18 }
  0x4e   :  { %p728_p7 = scmp.ne.s32.totalorder %s75_s18, %s727_s2  ;;  %p733_p9 = scmp.lt.s32.totalorder %s727_s2, %s727_s2 }
  0x50   :  { %p734_p10 = por %p733_p9, %p732_p8 }
  0x52   :  { %p735_p11 = pnand %p734_p10, %p728_p7 }
  0x54   :  { %738 = shalt.err (!%p735_p11)
}
  0x55   :  { %80 = dma.hbm_to_vmem [thread:$0]  %s1001_s5, 512, %s75_s18, [#allocation9], %s795_s21, %s795_s21, %s796_s22  }
  0x56   :  { %s739_s11 = scalar_lea.hbm %s1004_s8, 16 }
  0x57   :  { %p740_p12 = scmp.ne.s32.totalorder %s1004_s8, %s739_s11  ;;  %p743_p13 = scmp.lt.u32.totalorder %s739_s11, %s1004_s8 }
  0x59   :  { %p745_p0 = pnand %p743_p13, %p740_p12 }
  0x5b   :  { %748 = shalt.err (!%p745_p0)
}
  0x5c   :  { %s749_s0 = scalar_lea.vmem %s92_s20, 16  ;;  %s753_s15 = scalar_lea.vmem %s92_s20, 32 }
  0x5d   :  { %p750_p1 = scmp.ne.s32.totalorder %s92_s20, %s749_s0  ;;  %p754_p2 = scmp.lt.s32.totalorder %s92_s20, %s92_s20 }
  0x5e   :  { %p755_p3 = scmp.lt.s32.totalorder %s753_s15, %s749_s0 }
  0x60   :  { %p756_p4 = por %p755_p3, %p754_p2 }
  0x62   :  { %p757_p5 = pnand %p756_p4, %p750_p1 }
  0x64   :  { %760 = shalt.err (!%p757_p5)
}
  0x65   :  { %94 = dma.hbm_to_vmem [thread:$0]  %s1004_s8, 16, %s92_s20, [#allocation12]  }
  0x66   :  { %783 = dma.done.wait [#allocation3], 256  }
  0x67   :  { %784 = vsyncadd [#allocation3], 4294967040 }
  0x68   :  { %785 = dma.done.wait [#allocation6], 768  }
  0x69   :  { %786 = vsyncadd [#allocation6], 4294966528 }
  0x6a   :  { %787 = dma.done.wait [#allocation9], 1024  }
  0x6b   :  { %788 = vsyncadd [#allocation9], 4294966272 }
  0x6c   :  { %789 = dma.done.wait [#allocation12], 16  }
  0x6d   :  { %790 = vsyncadd [#allocation12], 4294967280  ;;  %vm128_vm0 = vcmask 261120   ;;  %v117_v0 = vld [vmem:[#allocation7] sm:$0xff]  ;;  %v118_v1 = vld [vmem:[#allocation7 + $0x8] sm:$0xff] }
  0x6e   :  { %v119_v2 = vld [vmem:[#allocation7 + $0x10] sm:$0xff]  ;;  %v586_v3 = vpack.c.bf16 %v118_v1, %v117_v0  ;;  %v120_v4 = vld [vmem:[#allocation7 + $0x18] sm:$0xff]  ;;  %v113_v5 = vld [vmem:[#allocation2] sm:$0xff] }
  0x6f   :  { %v590_v6 = vpack.c.bf16 %v120_v4, %v119_v2  ;;  %550 = vmatprep.mubr.msk.f32.mxu1 %vm128_vm0, %v113_v5  ;;  %v212_v7 = vld [vmem:[#allocation8] sm:$0xff]  ;;  %v213_v8 = vld [vmem:[#allocation8 + $0x8] sm:$0xff]  ;;  %v214_v10 = vld [vmem:[#allocation8 + $0x10] sm:$0xff] }
  0x70   :  { %587 = vmatprep.subr.bf16.mxu1 %v586_v3  ;;  %v594_v9 = vpack.c.bf16 %v213_v8, %v212_v7  ;;  %v215_v11 = vld [vmem:[#allocation8 + $0x18] sm:$0xff]  ;;  %v114_v12 = vld [vmem:[#allocation2 + $0x8] sm:$0xff]  ;;  %v115_v14 = vld [vmem:[#allocation5] sm:$0xff] }
  0x71   :  { %589 = vmatpush3.bf16.msra.mxu1 %v586_v3  ;;  %v598_v13 = vpack.c.bf16 %v215_v11, %v214_v10  ;;  %v116_v15 = vld [vmem:[#allocation5 + $0x8] sm:$0xff]  ;;  %v310_v16 = vld [vmem:[#allocation10] sm:$0xff]  ;;  %v311_v17 = vld [vmem:[#allocation10 + $0x8] sm:$0xff] }
  0x72   :  { %591 = vmatprep.subr.bf16.mxu1 %v590_v6  ;;  %v602_v18 = vpack.c.bf16 %v311_v17, %v310_v16  ;;  %v312_v19 = vld [vmem:[#allocation10 + $0x10] sm:$0xff]  ;;  %v313_v20 = vld [vmem:[#allocation10 + $0x18] sm:$0xff]  ;;  %v306_v22 = vld [vmem:[%s1000_s4] sm:$0xff] }
  0x73   :  { %v606_v21 = vpack.c.bf16 %v313_v20, %v312_v19  ;;  %v307_v23 = vld [vmem:[%s1000_s4 + $0x8] sm:$0xff]  ;;  %v510_v27 = vld [vmem:[%s1003_s7] ss:$0 sm:$0xff]  ;;  %v308_v34 = vld [vmem:[%s1000_s4 + $0x10] sm:$0xff] }
  0x74   :  { %603 = vmatprep.subr.bf16.mxu0 %v602_v18  ;;  %v610_v24 = vpack.c.bf16 %v307_v23, %v306_v22  ;;  %v507_v28 = vld [vmem:[%s1002_s6] ss:$0 sm:$0xff]  ;;  %v309_v35 = vld [vmem:[%s1000_s4 + $0x18] sm:$0xff]  ;;  %s801_s6 = smov [#allocation13]  }
  0x75   :  { %593 = vmatpush3.bf16.msra.mxu1 %v590_v6  ;;  %605 = vmatpush3.bf16.msra.mxu0 %v602_v18  ;;  %v614_v38 = vpack.c.bf16 %v309_v35, %v308_v34  ;;  %v517_v42 = vld [vmem:[#allocation11] ss:$0 sm:$0xff]  ;;  %s492_s4 = sshll.u32 %s801_s6, 4  ;;  %s493_s4 = int_to_ptr.vmem [resolvable:$true] %s492_s4 }
  0x76   :  { %595 = vmatprep.subr.bf16.mxu1 %v594_v9  ;;  %607 = vmatprep.subr.bf16.mxu0 %v606_v21  ;;  %s761_s7 = scalar_lea.vmem %s493_s4, 256  ;;  %p766_p7 = scmp.lt.s32.totalorder %s493_s4, %s493_s4 }
  0x77   :  { %p762_p6 = scmp.ne.s32.totalorder %s493_s4, %s761_s7  ;;  %p767_p8 = scmp.lt.s32.totalorder %s761_s7, %s761_s7 }
  0x78   :  { %551 = vmatmul.mubr.msk.f32.vlgmr.msra.gmra.mrb[0].mxu1 %vm128_vm0, %v114_v12 }
  0x79   :  { %597 = vmatpush3.bf16.msra.mxu1 %v594_v9  ;;  %561 = vmatprep.mubr.msk.f32.mxu1 %vm128_vm0, %v115_v14  ;;  %p768_p9 = por %p767_p8, %p766_p7 }
  0x7a   :  { %599 = vmatprep.subr.bf16.mxu1 %v598_v13  ;;  %609 = vmatpush3.bf16.msra.mxu0 %v606_v21 }
  0x7b   :  { %611 = vmatprep.subr.bf16.mxu0 %v610_v24  ;;  %p769_p10 = pnand %p768_p9, %p762_p6 }
  0x7d   :  { %601 = vmatpush3.bf16.msra.mxu1 %v598_v13 }
  0x80   :  { %562 = vmatmul.mubr.msk.f32.vlgmr.msra.gmra.mrb[2].mxu1 %vm128_vm0, %v116_v15 }
 0x14b   :  { %v552_v25 = vpop.f32.mrb[0].mxu1 }
 0x14c   :  { %v201_v26 = vpop.f32.mrb[1].mxu1  ;;  %v207_v40 = vadd.f32 %v552_v25, %v507_v28 }
 0x14d   :  { %v202_v32 = vadd.f32 %v507_v28, %v201_v26 }
 0x14e   :  { %v211_v41 = vmax.f32 %v207_v40, 0.0 }
 0x14f   :  { %v210_v39 = vmax.f32 %v202_v32, 0.0 }
 0x153   :  { %v563_v29 = vpop.f32.mrb[2].mxu1 }
 0x154   :  { %v301_v30 = vadd.f32 %v563_v29, %v510_v27  ;;  %v295_v31 = vpop.f32.mrb[3].mxu1 }
 0x155   :  { %v296_v33 = vadd.f32 %v510_v27, %v295_v31 }
 0x156   :  { %v305_v37 = vmax.f32 %v301_v30, 0.0 }
 0x157   :  { %v304_v36 = vmax.f32 %v296_v33, 0.0 }
 0x159   :  { %572 = vmatprep.mubr.msk.f32.mxu0 %vm128_vm0, %v304_v36 }
 0x15a   :  { %573 = vmatmul.mubr.msk.f32.vlgmr.msra.gmra.mrb[0].mxu0 %vm128_vm0, %v305_v37 }
 0x15b   :  { %613 = vmatpush3.bf16.msra.mxu0 %v610_v24  ;;  %583 = vmatprep.mubr.msk.f32.mxu0 %vm128_vm0, %v210_v39 }
 0x15c   :  { %615 = vmatprep.subr.bf16.mxu0 %v614_v38 }
 0x15f   :  { %617 = vmatpush3.bf16.msra.mxu0 %v614_v38 }
 0x162   :  { %584 = vmatmul.mubr.msk.f32.vlgmr.msra.gmra.mrb[0].mxu0 %vm128_vm0, %v211_v41 }
 0x235   :  { %v585_v43 = vpop.f32.mrb[0].mxu0 }
 0x236   :  { %v484_v44 = vadd.f32 %v585_v43, %v517_v42  ;;  %v467_v45 = vpop.f32.mrb[1].mxu0 }
 0x237   :  { %v483_v46 = vadd.f32 %v517_v42, %v467_v45 }
 0x238   :  { %486 = vst.msk [vmem:[#allocation13 + $0x8] sm:$0xff] %vm128_vm0, %v484_v44 }
 0x239   :  { %485 = vst.msk [vmem:[#allocation13] sm:$0xff] %vm128_vm0, %v483_v46 }
 0x23a   :  { %772 = shalt.err (!%p769_p10)
}
 0x23b   :  { %s773_s29 = scalar_lea.hbm %s1005_s9, 256 }
 0x23c   :  { %p774_p11 = scmp.ne.s32.totalorder %s1005_s9, %s773_s29  ;;  %p777_p12 = scmp.lt.u32.totalorder %s773_s29, %s1005_s9 }
 0x23e   :  { %p779_p13 = pnand %p777_p12, %p774_p11 }
 0x240   :  { %782 = shalt.err (!%p779_p13)
}
 0x241   :  { %498 = dma.vmem_to_hbm [thread:$0]  %s493_s4, 256, %s1005_s9, [#allocation4], %s795_s21, %s795_s21, %s796_s22  }
 0x242   :  { %791 = dma.done.wait [#allocation4], 256  }
 0x243   :  { %792 = vsyncadd [#allocation4], 4294967040 }
 0x244   :  { %502 = vsyncpa [#allocation3], 1 }
 0x245   :  { %503 = vsyncpa [#allocation6], 1 }
 0x246   :  { %504 = vsyncpa [#allocation9], 1 }
 0x247   :  { %505 = vsyncpa [#allocation12], 1 }
 0x248   :  { %506 = vsyncpa [#allocation4], 1 }

</bundles_post_ra>
